<compile_context>
chip_gen: v7x
topology: tpu7x:2x2x1
jax: 0.10.0
libtpu: 0.0.40
codegen_flags: <defaults>
</compile_context>

<pallas_src>
import functools
import math

import jax
import jax.numpy as jnp
from jax import lax
from jax.experimental import pallas as pl
from jax.experimental.pallas import tpu as pltpu

LN_EPS = 1e-5
MIX_RATIO = 0.5
MIX_DENOM = math.sqrt(MIX_RATIO ** 2 + (1.0 - MIX_RATIO) ** 2)
MIX_A = MIX_RATIO / MIX_DENOM            # multiplies x
MIX_B = (1.0 - MIX_RATIO) / MIX_DENOM    # multiplies residual

_LANE = 128
_SUBLANE = 8
_VMEM_BUDGET = 40 * 1024 * 1024          # conservative across v5e/v6e (128 MiB) and v7x (64 MiB)


def _round_up(x, m):
    return (x + m - 1) // m * m


def geodiff_kernel(x_ref, c_ref, w_ref, b_ref, o_ref, *, d_actual, mm_dtype):
    """One (tm, D_pad) row tile: SiLU -> fused cond matmul -> LayerNorm -> modulate -> mix."""
    d_pad = x_ref.shape[-1]

    x = x_ref[...].astype(jnp.float32)            # (tm, D_pad)
    c = c_ref[...].astype(jnp.float32)            # (tm, D_pad)

    # cond path: SiLU then a single fused Linear(dim -> 2*dim) on the MXU.
    # bf16 operands (mm_dtype) with f32 accumulation keep full MXU rate.
    c_act = (c * jax.nn.sigmoid(c)).astype(mm_dtype)
    y = jnp.dot(c_act, w_ref[...], preferred_element_type=jnp.float32) + b_ref[...]
    gamma1 = y[:, :d_pad]        # == 1 + gamma (the +1 is folded into the bias)
    mu = y[:, d_pad:]

    # LayerNorm over the *actual* feature dim (no affine, biased variance, eps inside rsqrt).
    if d_actual == d_pad:
        mean = jnp.mean(x, axis=-1, keepdims=True)
        xc = x - mean
        var = jnp.mean(xc * xc, axis=-1, keepdims=True)
    else:
        # Feature dim was zero-padded up to a lane multiple; mask the padded lanes.
        inv_d = 1.0 / d_actual
        mean = jnp.sum(x, axis=-1, keepdims=True) * inv_d
        lane = lax.broadcasted_iota(jnp.int32, x.shape, 1)
        xc = jnp.where(lane < d_actual, x - mean, 0.0)
        var = jnp.sum(xc * xc, axis=-1, keepdims=True) * inv_d
    nx = xc * lax.rsqrt(var + LN_EPS)

    residual = gamma1 * nx + mu
    # mix_embeddings(x, residual, 0.5) with constants folded.
    o_ref[...] = (x * MIX_A + residual * MIX_B).astype(o_ref.dtype)


def geodiff_block(x, cond, w_cond, b_cond, *, tm=None, matmul_dtype=jnp.bfloat16):
    """GeoDiffBlock.forward.

    x, cond : (B, S, D)
    w_cond  : (2D, D) torch-layout weight of nn.Linear(dim, 2*dim)
    b_cond  : (2D,)
    """
    B, S, D = x.shape
    M = B * S
    D_pad = _round_up(D, _LANE)

    # ---- pick the biggest row tile that fits a conservative VMEM budget ----
    w_bytes = D_pad * 2 * D_pad * jnp.dtype(matmul_dtype).itemsize
    b_bytes = 2 * D_pad * 4
    fixed = 2 * (w_bytes + b_bytes)                      # double-buffered weight / bias
    if tm is None:
        tm = 1024
        while tm > _SUBLANE:
            est = 2 * 3 * tm * D_pad * 4 + fixed         # x + cond + out tiles, double-buffered
            if est <= _VMEM_BUDGET:
                break
            tm //= 2
    assert tm % _SUBLANE == 0, "tm must be a multiple of 8"
    tm = min(tm, _round_up(M, _SUBLANE))                 # don't pad tiny inputs to huge tiles
    M_pad = _round_up(M, tm)

    # ---- wrapper-side data prep (pad to lane/sublane-dense shapes) ----
    x2 = jnp.pad(x.reshape(M, D), ((0, M_pad - M), (0, D_pad - D)))
    c2 = jnp.pad(cond.reshape(M, D), ((0, M_pad - M), (0, D_pad - D)))

    # torch Linear: y = a @ W.T + b ; output columns [0:D] = gamma, [D:2D] = mu.
    # Fuse into a single (D_pad, 2*D_pad) weight with gamma in lanes [0:D_pad),
    # mu in lanes [D_pad:2*D_pad); fold the (1 + gamma) into the gamma bias.
    w_t = w_cond.T.astype(jnp.float32)                   # (D, 2D)
    w_f = jnp.zeros((D_pad, 2 * D_pad), jnp.float32)
    w_f = w_f.at[:D, :D].set(w_t[:, :D])                 # W_gamma
    w_f = w_f.at[:D, D_pad:D_pad + D].set(w_t[:, D:])    # W_mu
    w_f = w_f.astype(matmul_dtype)

    b_f = jnp.zeros((1, 2 * D_pad), jnp.float32)
    b_f = b_f.at[0, :D].set(b_cond[:D].astype(jnp.float32) + 1.0)
    b_f = b_f.at[0, D_pad:D_pad + D].set(b_cond[D:].astype(jnp.float32))

    grid = (M_pad // tm,)

    itemsize = jnp.dtype(x.dtype).itemsize
    cost = pl.CostEstimate(
        flops=2 * M_pad * D_pad * (2 * D_pad) + 12 * M_pad * D_pad,
        transcendentals=M_pad * D_pad + M_pad,            # sigmoid per element + rsqrt per row
        bytes_accessed=3 * M_pad * D_pad * itemsize + w_bytes + b_bytes,
    )

    vmem_est = 2 * 3 * tm * D_pad * 4 + fixed
    vmem_limit = int(min(64 * 1024 * 1024,
                         max(32 * 1024 * 1024, vmem_est + 4 * 1024 * 1024)))

    kernel = functools.partial(geodiff_kernel, d_actual=D, mm_dtype=matmul_dtype)

    out = pl.pallas_call(
        kernel,
        out_shape=jax.ShapeDtypeStruct((M_pad, D_pad), x.dtype),
        grid_spec=pltpu.PrefetchScalarGridSpec(
            num_scalar_prefetch=0,
            grid=grid,
            in_specs=[
                pl.BlockSpec((tm, D_pad), lambda i: (i, 0)),          # x rows
                pl.BlockSpec((tm, D_pad), lambda i: (i, 0)),          # cond rows
                pl.BlockSpec((D_pad, 2 * D_pad), lambda i: (0, 0)),   # fused W (gamma | mu)
                pl.BlockSpec((1, 2 * D_pad), lambda i: (0, 0)),       # fused bias (1+bg | bm)
            ],
            out_specs=pl.BlockSpec((tm, D_pad), lambda i: (i, 0)),
        ),
        compiler_params=pltpu.CompilerParams(
            dimension_semantics=("parallel",),
            vmem_limit_bytes=vmem_limit,
        ),
        cost_estimate=cost,
    )(x2, c2, w_f, b_f)

    return out[:M, :D].reshape(B, S, D)


def geodiff_block_ref(x, cond, w_cond, b_cond):
    """Pure-JAX f32 reference mirroring the PyTorch module."""
    c_act = cond * jax.nn.sigmoid(cond)
    y = jnp.einsum('bsd,od->bso', c_act, w_cond) + b_cond
    D = x.shape[-1]
    gamma, mu = y[..., :D], y[..., D:]
    mean = jnp.mean(x, axis=-1, keepdims=True)
    var = jnp.mean((x - mean) ** 2, axis=-1, keepdims=True)
    nx = (x - mean) * jax.lax.rsqrt(var + LN_EPS)
    residual = (1.0 + gamma) * nx + mu
    return (x * MIX_RATIO + residual * (1.0 - MIX_RATIO)) / MIX_DENOM


if __name__ == "__main__":
    B, S, dim, hdim = 2, 8, 32, 64   # hdim only parameterizes the unused self.model MLP

    key = jax.random.PRNGKey(0)
    kx, kc, kw, kb = jax.random.split(key, 4)

    x = jax.random.normal(kx, (B, S, dim), dtype=jnp.float32)
    cond = jax.random.normal(kc, (B, S, dim), dtype=jnp.float32)

    # Deterministic parameter init (torch-Linear-style uniform bounds).
    bound = 1.0 / math.sqrt(dim)
    w_cond = jax.random.uniform(kw, (2 * dim, dim), jnp.float32, -bound, bound)
    b_cond = jax.random.uniform(kb, (2 * dim,), jnp.float32, -bound, bound)

    ref = geodiff_block_ref(x, cond, w_cond, b_cond)

    # Exact-precision path (f32 matmul): tight check of the kernel logic.
    out_f32 = jax.block_until_ready(
        geodiff_block(x, cond, w_cond, b_cond, matmul_dtype=jnp.float32))
    assert out_f32.shape == (B, S, dim)
    assert jnp.allclose(out_f32, ref, atol=1e-5, rtol=1e-5), "f32 kernel mismatch vs reference"

    # Default fast path: bf16 matmul on the MXU with f32 accumulation.
    out_bf16 = jax.block_until_ready(geodiff_block(x, cond, w_cond, b_cond))
    assert out_bf16.shape == (B, S, dim)
    assert jnp.allclose(out_bf16, ref, atol=2e-2, rtol=2e-2), "bf16 kernel mismatch vs reference"

    print("KERNEL_OK")
</pallas_src>

<mosaic_0001>
module attributes {stable_mosaic.version = 11 : i64} {
  func.func @geodiff_kernel(%arg0: i32, %arg1: memref<16x128xf32, #tpu.memory_space<vmem>>, %arg2: memref<16x128xf32, #tpu.memory_space<vmem>>, %arg3: memref<128x256xf32, #tpu.memory_space<vmem>>, %arg4: memref<1x256xf32, #tpu.memory_space<vmem>>, %arg5: memref<16x128xf32, #tpu.memory_space<vmem>>) attributes {dimension_semantics = [#tpu.dimension_semantics<parallel>], iteration_bounds = array<i64: 1>, scalar_prefetch = 0 : i64, scratch_operands = 0 : i64, tpu.core_type = #tpu.core_type<tc>, window_params = [{transform_indices = @transform_0, window_bounds = array<i64: 16, 128>}, {transform_indices = @transform_1, window_bounds = array<i64: 16, 128>}, {pipeline_mode = #tpu.pipeline_mode<synchronous>, transform_indices = @transform_2, window_bounds = array<i64: 128, 256>}, {pipeline_mode = #tpu.pipeline_mode<synchronous>, transform_indices = @transform_3, window_bounds = array<i64: 1, 256>}, {transform_indices = @transform_4, window_bounds = array<i64: 16, 128>}]} {
    %c0 = arith.constant 0 : index
    %c0_0 = arith.constant 0 : index
    %0 = vector.load %arg1[%c0, %c0_0] : memref<16x128xf32, #tpu.memory_space<vmem>>, vector<16x128xf32>
    %c0_1 = arith.constant 0 : index
    %c0_2 = arith.constant 0 : index
    %1 = vector.load %arg2[%c0_1, %c0_2] : memref<16x128xf32, #tpu.memory_space<vmem>>, vector<16x128xf32>
    %2 = arith.negf %1 : vector<16x128xf32>
    %3 = math.exp %2 : vector<16x128xf32>
    %cst = arith.constant 1.000000e+00 : f32
    %4 = vector.broadcast %cst : f32 to vector<16x128xf32>
    %5 = arith.addf %4, %3 : vector<16x128xf32>
    %6 = arith.divf %4, %5 : vector<16x128xf32>
    %7 = arith.mulf %1, %6 : vector<16x128xf32>
    %c0_3 = arith.constant 0 : index
    %c0_4 = arith.constant 0 : index
    %8 = vector.load %arg3[%c0_3, %c0_4] : memref<128x256xf32, #tpu.memory_space<vmem>>, vector<128x256xf32>
    %cst_5 = arith.constant dense<0.000000e+00> : vector<16x256xf32>
    %9 = tpu.matmul %7, %8, %cst_5 {dimension_numbers = #tpu.dot_dimension_numbers<[1], [0], [0], [1], [0, 0, 1, 1], [], []>} : vector<16x128xf32>, vector<128x256xf32>, vector<16x256xf32> -> vector<16x256xf32>
    %c0_6 = arith.constant 0 : index
    %c0_7 = arith.constant 0 : index
    %10 = vector.load %arg4[%c0_6, %c0_7] : memref<1x256xf32, #tpu.memory_space<vmem>>, vector<1x256xf32>
    %11 = vector.broadcast %10 : vector<1x256xf32> to vector<16x256xf32>
    %12 = arith.addf %9, %11 : vector<16x256xf32>
    %13 = vector.extract_strided_slice %12 {offsets = [0, 0], sizes = [16, 128], strides = [1, 1]} : vector<16x256xf32> to vector<16x128xf32>
    %14 = vector.extract_strided_slice %12 {offsets = [0, 128], sizes = [16, 128], strides = [1, 1]} : vector<16x256xf32> to vector<16x128xf32>
    %cst_8 = arith.constant dense<0.000000e+00> : vector<16xf32>
    %15 = vector.multi_reduction <add>, %0, %cst_8 [1] : vector<16x128xf32> to vector<16xf32>
    %16 = vector.shape_cast %15 : vector<16xf32> to vector<16x1xf32>
    %cst_9 = arith.constant 3.125000e-02 : f32
    %17 = vector.broadcast %cst_9 : f32 to vector<16x1xf32>
    %18 = arith.mulf %16, %17 : vector<16x1xf32>
    %19 = tpu.iota {dimensions = array<i32: 1>} : vector<16x128xi32>
    %c32_i32 = arith.constant 32 : i32
    %20 = vector.broadcast %c32_i32 : i32 to vector<16x128xi32>
    %21 = arith.cmpi slt, %19, %20 : vector<16x128xi32>
    %22 = vector.broadcast %18 : vector<16x1xf32> to vector<16x128xf32>
    %23 = arith.subf %0, %22 : vector<16x128xf32>
    %cst_10 = arith.constant 0.000000e+00 : f32
    %24 = vector.broadcast %cst_10 : f32 to vector<16x128xf32>
    %25 = arith.select %21, %23, %24 : vector<16x128xi1>, vector<16x128xf32>
    %26 = arith.mulf %25, %25 : vector<16x128xf32>
    %cst_11 = arith.constant dense<0.000000e+00> : vector<16xf32>
    %27 = vector.multi_reduction <add>, %26, %cst_11 [1] : vector<16x128xf32> to vector<16xf32>
    %28 = vector.shape_cast %27 : vector<16xf32> to vector<16x1xf32>
    %cst_12 = arith.constant 3.125000e-02 : f32
    %29 = vector.broadcast %cst_12 : f32 to vector<16x1xf32>
    %30 = arith.mulf %28, %29 : vector<16x1xf32>
    %cst_13 = arith.constant 9.99999974E-6 : f32
    %31 = vector.broadcast %cst_13 : f32 to vector<16x1xf32>
    %32 = arith.addf %30, %31 : vector<16x1xf32>
    %33 = math.rsqrt %32 : vector<16x1xf32>
    %34 = vector.broadcast %33 : vector<16x1xf32> to vector<16x128xf32>
    %35 = arith.mulf %25, %34 : vector<16x128xf32>
    %36 = arith.mulf %13, %35 : vector<16x128xf32>
    %37 = arith.addf %36, %14 : vector<16x128xf32>
    %cst_14 = arith.constant 0.707106769 : f32
    %38 = vector.broadcast %cst_14 : f32 to vector<16x128xf32>
    %39 = arith.mulf %0, %38 : vector<16x128xf32>
    %cst_15 = arith.constant 0.707106769 : f32
    %40 = vector.broadcast %cst_15 : f32 to vector<16x128xf32>
    %41 = arith.mulf %37, %40 : vector<16x128xf32>
    %42 = arith.addf %39, %41 : vector<16x128xf32>
    %c0_16 = arith.constant 0 : index
    %c0_17 = arith.constant 0 : index
    %43 = vector.load %arg5[%c0_16, %c0_17] : memref<16x128xf32, #tpu.memory_space<vmem>>, vector<16x128xf32>
    tpu.vector_store %arg5[%c0_16, %c0_17], %42 {strides = array<i32>} : memref<16x128xf32, #tpu.memory_space<vmem>>, vector<16x128xf32>,
    return
  }
  func.func @transform_0(%arg0: i32) -> (i32, i32) {
    %c0_i32 = arith.constant 0 : i32
    %c0_i32_0 = arith.constant 0 : i32
    return %arg0, %c0_i32 : i32, i32
  }
  func.func @transform_1(%arg0: i32) -> (i32, i32) {
    %c0_i32 = arith.constant 0 : i32
    %c0_i32_0 = arith.constant 0 : i32
    return %arg0, %c0_i32 : i32, i32
  }
  func.func @transform_2(%arg0: i32) -> (i32, i32) {
    %c0_i32 = arith.constant 0 : i32
    %c0_i32_0 = arith.constant 0 : i32
    %c0_i32_1 = arith.constant 0 : i32
    return %c0_i32, %c0_i32_0 : i32, i32
  }
  func.func @transform_3(%arg0: i32) -> (i32, i32) {
    %c0_i32 = arith.constant 0 : i32
    %c0_i32_0 = arith.constant 0 : i32
    %c0_i32_1 = arith.constant 0 : i32
    return %c0_i32, %c0_i32_0 : i32, i32
  }
  func.func @transform_4(%arg0: i32) -> (i32, i32) {
    %c0_i32 = arith.constant 0 : i32
    %c0_i32_0 = arith.constant 0 : i32
    return %arg0, %c0_i32 : i32, i32
  }
}

</mosaic_0001>

<bundles_post_ra>
// kernel: tpu_custom_call.1
= control target key start
LH: loop header
LB: loop body
LE: loop exit
PB: predicated region body
PF: predicated region fallthrough
CT: control target
= control target key end

     0   :  { %9 = vsyncpa [#allocation3], 0  ;;  %s531_s0 = inlined_call_operand.hbm [shape: f32[16,128], index: 0, kind: input, shape index: {}]   ;;  %s532_s1 = inlined_call_operand.hbm [shape: f32[16,128], index: 1, kind: input, shape index: {}]   ;;  %s533_s2 = inlined_call_operand.hbm [shape: f32[128,256], index: 2, kind: input, shape index: {}]   ;;  %s534_s3 = inlined_call_operand.vmem [shape: f32[1,256], index: 3, kind: input, shape index: {}]   ;;  %s535_s4 = inlined_call_operand.hbm [shape: f32[16,128], index: 4, kind: output, shape index: {}]  }
   0x1   :  { %10 = vsyncpa [#allocation6], 0 }
   0x2   :  { %11 = vsyncpa [#allocation4], 0  ;;  %s420_s15 = smov [#allocation5]   ;;  %s421_s17 = smov [#allocation2]  }
   0x3   :  { %s29_s16 = sshll.u32 %s420_s15, 4  ;;  %s17_s18 = sshll.u32 %s421_s17, 4  ;;  %s30_s16 = int_to_ptr.vmem [resolvable:$true] %s29_s16  ;;  %s454_s18 = int_to_ptr.vmem [resolvable:$true] %s17_s18 }
   0x4   :  { %s326_s21 = scalar_lea.hbm %s532_s1, 256 }
   0x5   :  { %p327_p0 = scmp.ne.s32.totalorder %s532_s1, %s326_s21  ;;  %p330_p1 = scmp.lt.u32.totalorder %s326_s21, %s532_s1 }
   0x7   :  { %p332_p2 = pnand %p330_p1, %p327_p0 }
   0x9   :  { %335 = shalt.err (!%p332_p2)
}
   0xa   :  { %s336_s26 = scalar_lea.vmem %s30_s16, 256  ;;  %p341_p4 = scmp.lt.s32.totalorder %s30_s16, %s30_s16 }
   0xb   :  { %p337_p3 = scmp.ne.s32.totalorder %s30_s16, %s336_s26  ;;  %p342_p5 = scmp.lt.s32.totalorder %s336_s26, %s336_s26 }
   0xd   :  { %p343_p6 = por %p342_p5, %p341_p4 }
   0xf   :  { %p344_p7 = pnand %p343_p6, %p337_p3 }
  0x11   :  { %347 = shalt.err (!%p344_p7)
}
  0x12   :  { %s422_s27 = smov 128   ;;  %s423_s28 = smov 8  }
  0x13   :  { %35 = dma.hbm_to_vmem [thread:$0]  %s532_s1, 256, %s30_s16, [#allocation6], %s422_s27, %s422_s27, %s423_s28  }
  0x14   :  { %s348_s7 = scalar_lea.hbm %s531_s0, 256 }
  0x15   :  { %p349_p8 = scmp.ne.s32.totalorder %s531_s0, %s348_s7  ;;  %p352_p9 = scmp.lt.u32.totalorder %s348_s7, %s531_s0 }
  0x17   :  { %p354_p10 = pnand %p352_p9, %p349_p8 }
  0x19   :  { %357 = shalt.err (!%p354_p10)
}
  0x1a   :  { %s358_s12 = scalar_lea.vmem %s454_s18, 256  ;;  %p363_p12 = scmp.lt.s32.totalorder %s454_s18, %s454_s18 }
  0x1b   :  { %p359_p11 = scmp.ne.s32.totalorder %s454_s18, %s358_s12  ;;  %p364_p13 = scmp.lt.s32.totalorder %s358_s12, %s358_s12 }
  0x1d   :  { %p365_p0 = por %p364_p13, %p363_p12 }
  0x1f   :  { %p366_p1 = pnand %p365_p0, %p359_p11 }
  0x21   :  { %369 = shalt.err (!%p366_p1)
}
  0x22   :  { %23 = dma.hbm_to_vmem [thread:$0]  %s531_s0, 256, %s454_s18, [#allocation3], %s422_s27, %s422_s27, %s423_s28  }
  0x23   :  { %s424_s14 = smov [#allocation7]   ;;  %s370_s19 = scalar_lea.hbm %s533_s2, 4096 }
  0x24   :  { %s41_s15 = sshll.u32 %s424_s14, 4  ;;  %p371_p2 = scmp.ne.s32.totalorder %s533_s2, %s370_s19  ;;  %s42_s15 = int_to_ptr.vmem [resolvable:$true] %s41_s15 }
  0x25   :  { %p374_p3 = scmp.lt.u32.totalorder %s370_s19, %s533_s2 }
  0x27   :  { %p376_p4 = pnand %p374_p3, %p371_p2 }
  0x29   :  { %379 = shalt.err (!%p376_p4)
}
  0x2a   :  { %s380_s24 = scalar_lea.vmem %s42_s15, 4096  ;;  %p385_p6 = scmp.lt.s32.totalorder %s42_s15, %s42_s15 }
  0x2b   :  { %p381_p5 = scmp.ne.s32.totalorder %s42_s15, %s380_s24  ;;  %p386_p7 = scmp.lt.s32.totalorder %s380_s24, %s380_s24 }
  0x2d   :  { %p387_p8 = por %p386_p7, %p385_p6 }
  0x2f   :  { %p388_p9 = pnand %p387_p8, %p381_p5 }
  0x31   :  { %391 = shalt.err (!%p388_p9)
}
  0x32   :  { %s425_s0 = smov 256   ;;  %s426_s18 = smov 16  }
  0x33   :  { %47 = dma.hbm_to_vmem [thread:$0]  %s533_s2, 4096, %s42_s15, [#allocation6], %s425_s0, %s425_s0, %s426_s18  }
  0x34   :  { %414 = dma.done.wait [#allocation3], 256  }
  0x35   :  { %415 = vsyncadd [#allocation3], 4294967040 }
  0x36   :  { %416 = dma.done.wait [#allocation6], 4352  }
  0x37   :  { %417 = vsyncadd [#allocation6], 4294962944  ;;  %v427_v0 = vmov 0.0   ;;  %v503_v1 = vld [vmem:[#allocation2] sm:$0xff]  ;;  %v78_v2 = vld [vmem:[#allocation7 + $0x8] sm:$0xff]  ;;  %v111_v63 = vlaneseq }
  0x38   :  { %185 = vmatprep.mubr.f32.mxu0 %v427_v0  ;;  %191 = vmatprep.mubr.f32.mxu1 %v427_v0  ;;  %v506_v3 = vld [vmem:[#allocation2 + $0x8] sm:$0xff]  ;;  %v80_v4 = vld [vmem:[#allocation7 + $0x18] sm:$0xff]  ;;  %v77_v5 = vld [vmem:[#allocation7] sm:$0xff] }
  0x39   :  { %198 = vadd.xlane.f32.xlu0 %v503_v1  ;;  %v257_v6 = vpack.c.bf16 %v80_v4, %v78_v2  ;;  %v79_v7 = vld [vmem:[#allocation7 + $0x10] sm:$0xff]  ;;  %v82_v8 = vld [vmem:[#allocation7 + $0x28] sm:$0xff]  ;;  %v84_v9 = vld [vmem:[#allocation7 + $0x38] sm:$0xff]  ;;  %v205_v0 = vand.u32 127, %v111_v63 }
  0x3a   :  { %v259_v10 = vpack.c.bf16 %v79_v7, %v77_v5  ;;  %v261_v11 = vpack.c.bf16 %v84_v9, %v82_v8  ;;  %v81_v12 = vld [vmem:[#allocation7 + $0x20] sm:$0xff]  ;;  %v83_v13 = vld [vmem:[#allocation7 + $0x30] sm:$0xff]  ;;  %v86_v14 = vld [vmem:[#allocation7 + $0x48] sm:$0xff] }
  0x3b   :  { %258 = vmatprep.subr.bf16.mxu0 %v257_v6  ;;  %289 = vmatprep.subr.bf16.mxu1 %v257_v6  ;;  %v88_v15 = vld [vmem:[#allocation7 + $0x58] sm:$0xff]  ;;  %v263_v16 = vpack.c.bf16 %v83_v13, %v81_v12  ;;  %v85_v18 = vld [vmem:[#allocation7 + $0x40] sm:$0xff]  ;;  %v87_v19 = vld [vmem:[#allocation7 + $0x50] sm:$0xff]  ;;  %vm206_vm0 = vcmp.lt.s32.totalorder %v205_v0, 32 }
  0x3c   :  { %260 = vmatpush1.bf16.msra.mxu0 %v259_v10  ;;  %297 = vmatpush1.bf16.msra.mxu1 %v259_v10  ;;  %v265_v17 = vpack.c.bf16 %v88_v15, %v86_v14  ;;  %v90_v20 = vld [vmem:[#allocation7 + $0x68] sm:$0xff]  ;;  %v92_v21 = vld [vmem:[#allocation7 + $0x78] sm:$0xff]  ;;  %v267_v22 = vpack.c.bf16 %v87_v19, %v85_v18  ;;  %v89_v24 = vld [vmem:[#allocation7 + $0x60] sm:$0xff]  ;;  %v112_v19 = vshrl.u32 %v111_v63, 7 }
  0x3d   :  { %200 = vadd.xlane.f32.xlu0 %v506_v3  ;;  %262 = vmatprep.subr.bf16.mxu0 %v261_v11  ;;  %v269_v23 = vpack.c.bf16 %v92_v21, %v90_v20  ;;  %v91_v25 = vld [vmem:[#allocation7 + $0x70] sm:$0xff]  ;;  %v94_v26 = vld [vmem:[#allocation7 + $0x88] sm:$0xff]  ;;  %v96_v27 = vld [vmem:[#allocation7 + $0x98] sm:$0xff] }
  0x3e   :  { %290 = vmatprep.subr.bf16.mxu1 %v261_v11  ;;  %v61_v28 = vld [vmem:[#allocation5] sm:$0xff]  ;;  %v62_v30 = vld [vmem:[#allocation5 + $0x8] sm:$0xff]  ;;  %v271_v31 = vpack.c.bf16 %v91_v25, %v89_v24  ;;  %v273_v33 = vpack.c.bf16 %v96_v27, %v94_v26  ;;  %v93_v34 = vld [vmem:[#allocation7 + $0x80] sm:$0xff]  ;;  %v117_v26 = vsub.s32 1, %v112_v19 }
  0x3f   :  { %v255_v29 = vmul.f32 -1.442695, %v61_v28  ;;  %v256_v32 = vmul.f32 -1.442695, %v62_v30  ;;  %v95_v35 = vld [vmem:[#allocation7 + $0x90] sm:$0xff]  ;;  %v98_v36 = vld [vmem:[#allocation7 + $0xa8] sm:$0xff] }
  0x40   :  { %264 = vmatpush1.bf16.msra.mxu0 %v263_v16  ;;  %298 = vmatpush1.bf16.msra.mxu1 %v263_v16  ;;  %v100_v37 = vld [vmem:[#allocation7 + $0xb8] sm:$0xff]  ;;  %v275_v38 = vpack.c.bf16 %v95_v35, %v93_v34  ;;  %v97_v40 = vld [vmem:[#allocation7 + $0xa0] sm:$0xff]  ;;  %v99_v41 = vld [vmem:[#allocation7 + $0xb0] sm:$0xff] }
  0x41   :  { %266 = vmatprep.subr.bf16.mxu0 %v265_v17  ;;  %291 = vmatprep.subr.bf16.mxu1 %v265_v17  ;;  %314 = vpow2.f32 %v255_v29  ;;  %v277_v39 = vpack.c.bf16 %v100_v37, %v98_v36  ;;  %v102_v42 = vld [vmem:[#allocation7 + $0xc8] sm:$0xff]  ;;  %v104_v43 = vld [vmem:[#allocation7 + $0xd8] sm:$0xff]  ;;  %v279_v44 = vpack.c.bf16 %v99_v41, %v97_v40  ;;  %v101_v46 = vld [vmem:[#allocation7 + $0xc0] sm:$0xff]  ;;  %v229_v36 = vmul.f32 0.70710677, %v503_v1 }
  0x42   :  { %316 = vpow2.f32 %v256_v32  ;;  %v281_v45 = vpack.c.bf16 %v104_v43, %v102_v42  ;;  %v103_v47 = vld [vmem:[#allocation7 + $0xd0] sm:$0xff]  ;;  %v106_v48 = vld [vmem:[#allocation7 + $0xe8] sm:$0xff]  ;;  %v108_v49 = vld [vmem:[#allocation7 + $0xf8] sm:$0xff]  ;;  %v230_v42 = vmul.f32 0.70710677, %v506_v3 }
  0x43   :  { %v283_v52 = vpack.c.bf16 %v103_v47, %v101_v46  ;;  %v285_v54 = vpack.c.bf16 %v108_v49, %v106_v48  ;;  %v105_v55 = vld [vmem:[#allocation7 + $0xe0] sm:$0xff]  ;;  %v107_v56 = vld [vmem:[#allocation7 + $0xf0] sm:$0xff] }
  0x44   :  { %268 = vmatpush1.bf16.msra.mxu0 %v267_v22  ;;  %299 = vmatpush1.bf16.msra.mxu1 %v267_v22  ;;  %v287_v58 = vpack.c.bf16 %v107_v56, %v105_v55  ;;  %v109_v25 = vld [vmem:[%s534_s3] sm:$0x3]  ;;  %s428_s3 = smov [#allocation8]  }
  0x45   :  { %270 = vmatprep.subr.bf16.mxu0 %v269_v23  ;;  %292 = vmatprep.subr.bf16.mxu1 %v269_v23  ;;  %v113_v23 = vsub.s32 0, %v112_v19  ;;  %s242_s30 = sshll.u32 %s428_s3, 4  ;;  %s243_s30 = int_to_ptr.vmem [resolvable:$true] %s242_s30 }
  0x46   :  { %s392_s5 = scalar_lea.vmem %s243_s30, 256  ;;  %p397_p11 = scmp.lt.s32.totalorder %s243_s30, %s243_s30 }
  0x47   :  { %v114_v27 = vrot.slane %v109_v25, %v113_v23  ;;  %p393_p10 = scmp.ne.s32.totalorder %s243_s30, %s392_s5  ;;  %p398_p12 = scmp.lt.s32.totalorder %s392_s5, %s392_s5 }
  0x48   :  { %272 = vmatpush1.bf16.msra.mxu0 %v271_v31  ;;  %300 = vmatpush1.bf16.msra.mxu1 %v271_v31 }
  0x49   :  { %274 = vmatprep.subr.bf16.mxu0 %v273_v33  ;;  %293 = vmatprep.subr.bf16.mxu1 %v273_v33  ;;  %p399_p13 = por %p398_p12, %p397_p11 }
  0x4b   :  { %v315_v50 = vpop.eup %314  ;;  %p400_p0 = pnand %p399_p13, %p393_p10 }
  0x4c   :  { %276 = vmatpush1.bf16.msra.mxu0 %v275_v38  ;;  %301 = vmatpush1.bf16.msra.mxu1 %v275_v38  ;;  %v317_v51 = vpop.eup %316  ;;  %v69_v53 = vadd.f32 1.0, %v315_v50 }
  0x4d   :  { %278 = vmatprep.subr.bf16.mxu0 %v277_v39  ;;  %294 = vmatprep.subr.bf16.mxu1 %v277_v39  ;;  %v70_v57 = vadd.f32 1.0, %v317_v51 }
  0x4e   :  { %318 = vrcp.f32 %v69_v53 }
  0x4f   :  { %320 = vrcp.f32 %v70_v57 }
  0x50   :  { %280 = vmatpush1.bf16.msra.mxu0 %v279_v44  ;;  %302 = vmatpush1.bf16.msra.mxu1 %v279_v44 }
  0x51   :  { %282 = vmatprep.subr.bf16.mxu0 %v281_v45  ;;  %295 = vmatprep.subr.bf16.mxu1 %v281_v45 }
  0x54   :  { %284 = vmatpush1.bf16.msra.mxu0 %v283_v52  ;;  %303 = vmatpush1.bf16.msra.mxu1 %v283_v52 }
  0x55   :  { %286 = vmatprep.subr.bf16.mxu0 %v285_v54  ;;  %296 = vmatprep.subr.bf16.mxu1 %v285_v54 }
  0x58   :  { %288 = vmatpush1.bf16.msra.mxu0 %v287_v58  ;;  %304 = vmatpush1.bf16.msra.mxu1 %v287_v58  ;;  %v319_v59 = vpop.eup %318 }
  0x59   :  { %v321_v60 = vpop.eup %320  ;;  %v75_v61 = vmul.f32 %v319_v59, %v61_v28  ;;  %v118_v28 = vrot.slane %v109_v25, %v117_v26 }
  0x5a   :  { %v76_v62 = vmul.f32 %v321_v60, %v62_v30 }
  0x5b   :  { %186 = vmatmul.mubr.f32.vlgmr.msra.gmra.mrb[0].mxu0 %v75_v61 }
  0x5c   :  { %192 = vmatmul.mubr.f32.vlgmr.msra.gmra.mrb[0].mxu1 %v76_v62 }
  0xc6   :  { %v199_v2 = vpop.xlane.xlu0 %198 }
  0xc7   :  { %v202_v4 = vmul.f32 0.03125, %v199_v2 }
  0xc9   :  { %v207_v5 = vsub.f32 %v503_v1, %v202_v4 }
  0xca   :  { %v201_v6 = vpop.xlane.xlu0 %200 }
  0xcb   :  { %v203_v7 = vmul.f32 0.03125, %v201_v6  ;;  %v209_v8 = vsel %vm206_vm0, %v207_v5, 0.0 }
  0xcc   :  { %v211_v9 = vmul.f32 %v209_v8, %v209_v8 }
  0xcd   :  { %v208_v10 = vsub.f32 %v506_v3, %v203_v7 }
  0xce   :  { %213 = vadd.xlane.f32.xlu1 %v211_v9 }
  0xcf   :  { %v210_v11 = vsel %vm206_vm0, %v208_v10, 0.0 }
  0xd0   :  { %v212_v12 = vmul.f32 %v210_v11, %v210_v11 }
  0xd2   :  { %215 = vadd.xlane.f32.xlu1 %v212_v12 }
 0x12e   :  { %v187_v13 = vpop.f32.mrb[0].mxu0 }
 0x12f   :  { %v189_v14 = vpop.f32.mrb[1].mxu0  ;;  %v193_v15 = vpop.f32.mrb[0].mxu1  ;;  %v188_v29 = vadd.f32 %v187_v13, %v114_v27 }
 0x130   :  { %v195_v16 = vpop.f32.mrb[1].mxu1  ;;  %v190_v32 = vadd.f32 %v189_v14, %v118_v28  ;;  %v194_v34 = vadd.f32 %v193_v15, %v114_v27 }
 0x131   :  { %v196_v41 = vadd.f32 %v195_v16, %v118_v28 }
 0x15b   :  { %v214_v17 = vpop.xlane.xlu1 %213 }
 0x15c   :  { %v217_v18 = vmul.f32 0.03125, %v214_v17 }
 0x15e   :  { %v219_v20 = vadd.f32 1e-05, %v217_v18 }
 0x15f   :  { %v216_v21 = vpop.xlane.xlu1 %215 }
 0x160   :  { %322 = vrsqrt.f32 %v219_v20  ;;  %v218_v22 = vmul.f32 0.03125, %v216_v21 }
 0x162   :  { %v220_v24 = vadd.f32 1e-05, %v218_v22 }
 0x164   :  { %324 = vrsqrt.f32 %v220_v24 }
 0x16a   :  { %v323_v30 = vpop.eup %322 }
 0x16b   :  { %v223_v31 = vmul.f32 %v323_v30, %v209_v8 }
 0x16d   :  { %v225_v33 = vmul.f32 %v223_v31, %v188_v29 }
 0x16e   :  { %v325_v35 = vpop.eup %324 }
 0x16f   :  { %v227_v37 = vadd.f32 %v225_v33, %v190_v32  ;;  %v224_v38 = vmul.f32 %v325_v35, %v210_v11 }
 0x171   :  { %v231_v39 = vmul.f32 0.70710677, %v227_v37  ;;  %v226_v40 = vmul.f32 %v224_v38, %v194_v34 }
 0x173   :  { %v233_v43 = vadd.f32 %v231_v39, %v229_v36  ;;  %v228_v44 = vadd.f32 %v226_v40, %v196_v41 }
 0x175   :  { %235 = vst [vmem:[#allocation8] sm:$0xff] %v233_v43  ;;  %v232_v45 = vmul.f32 0.70710677, %v228_v44 }
 0x177   :  { %v234_v46 = vadd.f32 %v232_v45, %v230_v42 }
 0x179   :  { %236 = vst [vmem:[#allocation8 + $0x8] sm:$0xff] %v234_v46 }
 0x17a   :  { %403 = shalt.err (!%p400_p0)
}
 0x17b   :  { %s404_s8 = scalar_lea.hbm %s535_s4, 256 }
 0x17c   :  { %p405_p1 = scmp.ne.s32.totalorder %s535_s4, %s404_s8  ;;  %p408_p2 = scmp.lt.u32.totalorder %s404_s8, %s535_s4 }
 0x17e   :  { %p410_p3 = pnand %p408_p2, %p405_p1 }
 0x180   :  { %413 = shalt.err (!%p410_p3)
}
 0x181   :  { %248 = dma.vmem_to_hbm [thread:$0]  %s243_s30, 256, %s535_s4, [#allocation4], %s422_s27, %s422_s27, %s423_s28  }
 0x182   :  { %418 = dma.done.wait [#allocation4], 256  }
 0x183   :  { %419 = vsyncadd [#allocation4], 4294967040 }
 0x184   :  { %252 = vsyncpa [#allocation3], 1 }
 0x185   :  { %253 = vsyncpa [#allocation6], 1 }
 0x186   :  { %254 = vsyncpa [#allocation4], 1 }

</bundles_post_ra>
